<compile_context>
chip_gen: v7x
topology: tpu7x:2x2x1
jax: 0.10.0
libtpu: 0.0.40
codegen_flags: <defaults>
</compile_context>

<pallas_src>
import jax
import jax.numpy as jnp
from jax.experimental import pallas as pl
from jax.experimental.pallas import tpu as pltpu

_LANE = 128
_VMEM_TILE_BUDGET = 32 * 1024 * 1024   # conservative across v5e/v6e/v7x
_VMEM_LIMIT_BYTES = 48 * 1024 * 1024   # above the 16/32 MiB default scoped limits


def _round_up(x, m):
    return ((x + m - 1) // m) * m


def _choose_tk(in_dim):
    """Full-K single step unless in_dim is huge; then pick a 128-multiple divisor."""
    if in_dim <= 4096:
        return in_dim
    for cand in (4096, 2048, 1024, 512, 256, 128):
        if in_dim % cand == 0:
            return cand
    return in_dim


def _choose_tm(B, tk, n_pad, in_bytes, out_bytes):
    """Largest row tile that fits the VMEM budget (double-buffered x/out + acc)."""
    per_row = 2 * tk * in_bytes + 2 * n_pad * out_bytes + n_pad * 4
    fixed = 2 * tk * n_pad * in_bytes + 2 * n_pad * 4      # W + bias buffers
    tm = max(8, (_VMEM_TILE_BUDGET - fixed) // per_row)
    tm = min(tm, 1024)                    # keep per-step DMA reasonable
    tm = min(tm, _round_up(B, 8))         # never exceed the batch
    if B >= 512 and pl.cdiv(B, tm) < 2:   # v7x megacore: give both TCs work
        tm = _round_up(pl.cdiv(B, 2), 8)
    return max(8, (tm // 8) * 8)


def _gate_kernel(x_ref, w_ref, b_ref, o_ref, acc_ref):
    # x_ref: (tm, tk)  w_ref: (tk, n_pad)  b_ref: (1, n_pad)
    # o_ref: (tm, n_pad)  acc_ref: (tm, n_pad) f32
    k = pl.program_id(1)

    @pl.when(k == 0)
    def _():
        acc_ref[...] = jnp.zeros_like(acc_ref)

    acc_ref[...] += jnp.dot(x_ref[...], w_ref[...],
                            preferred_element_type=jnp.float32)

    @pl.when(k == pl.num_programs(1) - 1)
    def _():
        o_ref[...] = jnp.tanh(acc_ref[...] + b_ref[...]).astype(o_ref.dtype)


def prepare_gate_params(weight, bias):
    """PyTorch nn.Linear layout -> kernel layout, done once (not per call).

    weight: (n_expert, in_dim), bias: (n_expert,)
    returns: W (in_dim, n_pad) pre-transposed + zero-padded to 128 lanes,
             bias (1, n_pad) f32.
    """
    n_expert, in_dim = weight.shape
    n_pad = _round_up(n_expert, _LANE)
    w = jnp.zeros((in_dim, n_pad), weight.dtype).at[:, :n_expert].set(weight.T)
    b = jnp.zeros((1, n_pad), jnp.float32).at[0, :n_expert].set(
        bias.astype(jnp.float32))
    return w, b


def gate_func_apply(x, w_pad, b_pad, n_expert, *, compute_dtype=None):
    """x: (B, in_dim); w_pad/b_pad from prepare_gate_params."""
    B, in_dim = x.shape
    n_pad = w_pad.shape[1]
    out_dtype = x.dtype

    if compute_dtype is not None and compute_dtype != x.dtype:
        x_in = x.astype(compute_dtype)
        w_in = w_pad.astype(compute_dtype)
    else:
        x_in, w_in = x, w_pad

    in_bytes = jnp.dtype(x_in.dtype).itemsize
    out_bytes = jnp.dtype(out_dtype).itemsize

    tk = _choose_tk(in_dim)
    tm = _choose_tm(B, tk, n_pad, in_bytes, out_bytes)
    grid = (pl.cdiv(B, tm), pl.cdiv(in_dim, tk))

    cost = pl.CostEstimate(
        flops=2 * B * in_dim * n_pad,
        transcendentals=B * n_pad,
        bytes_accessed=(B * in_dim * in_bytes + in_dim * n_pad * in_bytes
                        + n_pad * 4 + B * n_pad * out_bytes),
    )

    out_pad = pl.pallas_call(
        _gate_kernel,
        out_shape=jax.ShapeDtypeStruct((B, n_pad), out_dtype),
        grid_spec=pltpu.PrefetchScalarGridSpec(
            num_scalar_prefetch=0,
            grid=grid,
            in_specs=[
                pl.BlockSpec((tm, tk), lambda i, k: (i, k)),       # x tile (streamed)
                pl.BlockSpec((tk, n_pad), lambda i, k: (k, 0)),    # W (resident over i)
                pl.BlockSpec((1, n_pad), lambda i, k: (0, 0)),     # bias (resident)
            ],
            out_specs=pl.BlockSpec((tm, n_pad), lambda i, k: (i, 0)),  # lane-dense
            scratch_shapes=[pltpu.VMEM((tm, n_pad), jnp.float32)],
        ),
        compiler_params=pltpu.CompilerParams(
            dimension_semantics=("parallel", "arbitrary"),
            vmem_limit_bytes=_VMEM_LIMIT_BYTES,
        ),
        cost_estimate=cost,
    )(x_in, w_in, b_pad)

    if n_pad != n_expert:
        out_pad = out_pad[:, :n_expert]
    return out_pad


def gate_func(x, weight, bias, *, compute_dtype=None):
    """Convenience one-shot API matching the PyTorch module signature."""
    w_pad, b_pad = prepare_gate_params(weight, bias)
    return gate_func_apply(x, w_pad, b_pad, weight.shape[0],
                           compute_dtype=compute_dtype)


def gate_func_ref(x, weight, bias):
    return jnp.tanh(x @ weight.T + bias)


if __name__ == "__main__":
    key = jax.random.PRNGKey(0)
    B, in_dim, n_expert = 8, 32, 4

    kx, kw, kb = jax.random.split(key, 3)
    x = jax.random.normal(kx, (B, in_dim), dtype=jnp.float32)
    # Deterministic "nn.Linear"-style parameter init (uniform in +/- 1/sqrt(in_dim))
    bound = 1.0 / (in_dim ** 0.5)
    weight = jax.random.uniform(kw, (n_expert, in_dim), jnp.float32, -bound, bound)
    bias = jax.random.uniform(kb, (n_expert,), jnp.float32, -bound, bound)

    # Prepare params once (pre-transposed + lane-padded), then apply.
    w_pad, b_pad = prepare_gate_params(weight, bias)

    out = gate_func_apply(x, w_pad, b_pad, n_expert)
    out = jax.block_until_ready(out)

    ref = gate_func_ref(x, weight, bias)
    assert out.shape == (B, n_expert)
    assert jnp.allclose(out, ref, atol=1e-5, rtol=1e-5), "f32 mismatch vs reference"

    # bf16 fast path (halves x/W HBM bytes); looser tolerance vs pure-f32 ref.
    out_bf16 = gate_func_apply(x, w_pad, b_pad, n_expert,
                               compute_dtype=jnp.bfloat16)
    out_bf16 = jax.block_until_ready(out_bf16)
    assert jnp.allclose(out_bf16, ref, atol=2e-2, rtol=2e-2), "bf16 mismatch"

    print("KERNEL_OK")
</pallas_src>

<mosaic_0001>
module attributes {stable_mosaic.version = 11 : i64} {
  func.func @_gate_kernel(%arg0: i32, %arg1: i32, %arg2: memref<8x32xf32, #tpu.memory_space<vmem>>, %arg3: memref<32x128xf32, #tpu.memory_space<vmem>>, %arg4: memref<1x128xf32, #tpu.memory_space<vmem>>, %arg5: memref<8x128xf32, #tpu.memory_space<vmem>>, %arg6: memref<8x128xf32, #tpu.memory_space<vmem>>) attributes {dimension_semantics = [#tpu.dimension_semantics<parallel>, #tpu.dimension_semantics<arbitrary>], iteration_bounds = array<i64: 1, 1>, scalar_prefetch = 0 : i64, scratch_operands = 1 : i64, tpu.core_type = #tpu.core_type<tc>, window_params = [{transform_indices = @transform_0, window_bounds = array<i64: 8, 32>}, {transform_indices = @transform_1, window_bounds = array<i64: 32, 128>}, {pipeline_mode = #tpu.pipeline_mode<synchronous>, transform_indices = @transform_2, window_bounds = array<i64: 1, 128>}, {transform_indices = @transform_3, window_bounds = array<i64: 8, 128>}]} {
    %c0_i32 = arith.constant 0 : i32
    %0 = arith.cmpi eq, %arg1, %c0_i32 : i32
    %1 = arith.extui %0 : i1 to i32
    %c0_i32_0 = arith.constant 0 : i32
    %2 = arith.cmpi ne, %1, %c0_i32_0 : i32
    scf.if %2 {
      %cst_10 = arith.constant 0.000000e+00 : f32
      %12 = vector.broadcast %cst_10 : f32 to vector<8x128xf32>
      %c0_11 = arith.constant 0 : index
      %c0_12 = arith.constant 0 : index
      %13 = vector.load %arg6[%c0_11, %c0_12] : memref<8x128xf32, #tpu.memory_space<vmem>>, vector<8x128xf32>
      tpu.vector_store %arg6[%c0_11, %c0_12], %12 {strides = array<i32>} : memref<8x128xf32, #tpu.memory_space<vmem>>, vector<8x128xf32>,
    } else {
    }
    %c0 = arith.constant 0 : index
    %c0_1 = arith.constant 0 : index
    %3 = vector.load %arg6[%c0, %c0_1] : memref<8x128xf32, #tpu.memory_space<vmem>>, vector<8x128xf32>
    %c0_2 = arith.constant 0 : index
    %c0_3 = arith.constant 0 : index
    %4 = vector.load %arg2[%c0_2, %c0_3] : memref<8x32xf32, #tpu.memory_space<vmem>>, vector<8x32xf32>
    %c0_4 = arith.constant 0 : index
    %c0_5 = arith.constant 0 : index
    %5 = vector.load %arg3[%c0_4, %c0_5] : memref<32x128xf32, #tpu.memory_space<vmem>>, vector<32x128xf32>
    %cst = arith.constant dense<0.000000e+00> : vector<8x128xf32>
    %6 = tpu.matmul %4, %5, %cst {dimension_numbers = #tpu.dot_dimension_numbers<[1], [0], [0], [1], [0, 0, 1, 1], [], []>} : vector<8x32xf32>, vector<32x128xf32>, vector<8x128xf32> -> vector<8x128xf32>
    %7 = arith.addf %3, %6 : vector<8x128xf32>
    %c0_6 = arith.constant 0 : index
    %c0_7 = arith.constant 0 : index
    %8 = vector.load %arg6[%c0_6, %c0_7] : memref<8x128xf32, #tpu.memory_space<vmem>>, vector<8x128xf32>
    tpu.vector_store %arg6[%c0_6, %c0_7], %7 {strides = array<i32>} : memref<8x128xf32, #tpu.memory_space<vmem>>, vector<8x128xf32>,
    %c0_i32_8 = arith.constant 0 : i32
    %9 = arith.cmpi eq, %arg1, %c0_i32_8 : i32
    %10 = arith.extui %9 : i1 to i32
    %c0_i32_9 = arith.constant 0 : i32
    %11 = arith.cmpi ne, %10, %c0_i32_9 : i32
    scf.if %11 {
      %c0_10 = arith.constant 0 : index
      %c0_11 = arith.constant 0 : index
      %12 = vector.load %arg6[%c0_10, %c0_11] : memref<8x128xf32, #tpu.memory_space<vmem>>, vector<8x128xf32>
      %c0_12 = arith.constant 0 : index
      %c0_13 = arith.constant 0 : index
      %13 = vector.load %arg4[%c0_12, %c0_13] : memref<1x128xf32, #tpu.memory_space<vmem>>, vector<1x128xf32>
      %14 = vector.broadcast %13 : vector<1x128xf32> to vector<8x128xf32>
      %15 = arith.addf %12, %14 : vector<8x128xf32>
      %16 = math.tanh %15 : vector<8x128xf32>
      %c0_14 = arith.constant 0 : index
      %c0_15 = arith.constant 0 : index
      %17 = vector.load %arg5[%c0_14, %c0_15] : memref<8x128xf32, #tpu.memory_space<vmem>>, vector<8x128xf32>
      tpu.vector_store %arg5[%c0_14, %c0_15], %16 {strides = array<i32>} : memref<8x128xf32, #tpu.memory_space<vmem>>, vector<8x128xf32>,
    } else {
    }
    return
  }
  func.func @transform_0(%arg0: i32, %arg1: i32) -> (i32, i32) {
    %c0_i32 = arith.constant 0 : i32
    return %arg0, %arg1 : i32, i32
  }
  func.func @transform_1(%arg0: i32, %arg1: i32) -> (i32, i32) {
    %c0_i32 = arith.constant 0 : i32
    %c0_i32_0 = arith.constant 0 : i32
    return %arg1, %c0_i32 : i32, i32
  }
  func.func @transform_2(%arg0: i32, %arg1: i32) -> (i32, i32) {
    %c0_i32 = arith.constant 0 : i32
    %c0_i32_0 = arith.constant 0 : i32
    %c0_i32_1 = arith.constant 0 : i32
    return %c0_i32, %c0_i32_0 : i32, i32
  }
  func.func @transform_3(%arg0: i32, %arg1: i32) -> (i32, i32) {
    %c0_i32 = arith.constant 0 : i32
    %c0_i32_0 = arith.constant 0 : i32
    return %arg0, %c0_i32 : i32, i32
  }
}

</mosaic_0001>

<bundles_post_ra>
// kernel: tpu_custom_call.1
= control target key start
LH: loop header
LB: loop body
LE: loop exit
PB: predicated region body
PF: predicated region fallthrough
CT: control target
= control target key end

     0   :  { %8 = vsyncpa [#allocation4], 0  ;;  %s338_s0 = inlined_call_operand.hbm [shape: f32[8,32], index: 0, kind: input, shape index: {}]   ;;  %s339_s1 = inlined_call_operand.hbm [shape: f32[32,128], index: 1, kind: input, shape index: {}]   ;;  %s340_s2 = inlined_call_operand.vmem [shape: f32[1,128], index: 2, kind: input, shape index: {}]   ;;  %s341_s3 = inlined_call_operand.hbm [shape: f32[8,128], index: 3, kind: output, shape index: {}]  }
   0x1   :  { %9 = vsyncpa [#allocation7], 0 }
   0x2   :  { %10 = vsyncpa [#allocation5], 0  ;;  %s264_s12 = smov [#allocation3]   ;;  %s265_s14 = smov [#allocation6]  }
   0x3   :  { %s17_s13 = sshll.u32 %s264_s12, 4  ;;  %s26_s15 = sshll.u32 %s265_s14, 4  ;;  %s18_s13 = int_to_ptr.vmem [resolvable:$true] %s17_s13  ;;  %s292_s15 = int_to_ptr.vmem [resolvable:$true] %s26_s15 }
   0x4   :  { %s192_s18 = scalar_lea.hbm %s338_s0, 128 }
   0x5   :  { %p193_p0 = scmp.ne.s32.totalorder %s338_s0, %s192_s18  ;;  %p196_p1 = scmp.lt.u32.totalorder %s192_s18, %s338_s0 }
   0x7   :  { %p198_p2 = pnand %p196_p1, %p193_p0 }
   0x9   :  { %201 = shalt.err (!%p198_p2)
}
   0xa   :  { %s202_s23 = scalar_lea.vmem %s18_s13, 128  ;;  %p207_p4 = scmp.lt.s32.totalorder %s18_s13, %s18_s13 }
   0xb   :  { %p203_p3 = scmp.ne.s32.totalorder %s18_s13, %s202_s23  ;;  %p208_p5 = scmp.lt.s32.totalorder %s202_s23, %s202_s23 }
   0xd   :  { %p209_p6 = por %p208_p5, %p207_p4 }
   0xf   :  { %p210_p7 = pnand %p209_p6, %p203_p3 }
  0x11   :  { %213 = shalt.err (!%p210_p7)
}
  0x12   :  { %20 = dma.hbm_to_vmem [thread:$0]  %s338_s0, 128, %s18_s13, [#allocation4]  }
  0x13   :  { %s214_s28 = scalar_lea.hbm %s339_s1, 512 }
  0x14   :  { %p215_p8 = scmp.ne.s32.totalorder %s339_s1, %s214_s28  ;;  %p218_p9 = scmp.lt.u32.totalorder %s214_s28, %s339_s1 }
  0x16   :  { %p220_p10 = pnand %p218_p9, %p215_p8 }
  0x18   :  { %223 = shalt.err (!%p220_p10)
}
  0x19   :  { %s224_s6 = scalar_lea.vmem %s292_s15, 512  ;;  %p229_p12 = scmp.lt.s32.totalorder %s292_s15, %s292_s15 }
  0x1a   :  { %p225_p11 = scmp.ne.s32.totalorder %s292_s15, %s224_s6  ;;  %p230_p13 = scmp.lt.s32.totalorder %s224_s6, %s224_s6 }
  0x1c   :  { %p231_p0 = por %p230_p13, %p229_p12 }
  0x1e   :  { %p232_p1 = pnand %p231_p0, %p225_p11 }
  0x20   :  { %235 = shalt.err (!%p232_p1)
}
  0x21   :  { %s266_s0 = smov 128   ;;  %s267_s7 = smov 8  }
  0x22   :  { %32 = dma.hbm_to_vmem [thread:$0]  %s339_s1, 512, %s292_s15, [#allocation7], %s266_s0, %s266_s0, %s267_s7  }
  0x23   :  { %258 = dma.done.wait [#allocation4], 128  }
  0x24   :  { %259 = vsyncadd [#allocation4], 4294967168 }
  0x25   :  { %260 = dma.done.wait [#allocation7], 512  }
  0x26   :  { %261 = vsyncadd [#allocation7], 4294966784  ;;  %v268_v0 = vmov 0.0|0.0   ;;  %vm269_vm0 = vmmov 0   ;;  %v270_v1 = vmov 0.0   ;;  %v48_v2 = vld [vmem:[#allocation6] sm:$0xff] }
  0x27   :  { %176 = vmatprep.subr.bf16.mxu0 %v268_v0  ;;  %173 = vmatprep.mubr.msk.f32.mxu0 %vm269_vm0, %v270_v1  ;;  %v49_v3 = vld [vmem:[#allocation6 + $0x8] sm:$0xff]  ;;  %v50_v4 = vld [vmem:[#allocation6 + $0x10] sm:$0xff]  ;;  %v51_v6 = vld [vmem:[#allocation6 + $0x18] sm:$0xff]  ;;  %vm52_vm1 = vcmask 261120   ;;  %s271_s11 = smov [#allocation8]  }
  0x28   :  { %v177_v5 = vpack.c.bf16 %v49_v3, %v48_v2  ;;  %v180_v7 = vpack.c.bf16 %v51_v6, %v50_v4  ;;  %v47_v8 = vld [vmem:[#allocation3] sm:$0xff]  ;;  %s148_s12 = sshll.u32 %s271_s11, 4  ;;  %s149_s12 = int_to_ptr.vmem [resolvable:$true] %s148_s12 }
  0x29   :  { %v159_v9 = vld [vmem:[%s340_s2] ss:$0 sm:$0xff]  ;;  %s236_s13 = scalar_lea.vmem %s149_s12, 128  ;;  %p241_p3 = scmp.lt.s32.totalorder %s149_s12, %s149_s12 }
  0x2a   :  { %178 = vmatpush3.bf16.msra.mxu0 %v177_v5  ;;  %p237_p2 = scmp.ne.s32.totalorder %s149_s12, %s236_s13  ;;  %p242_p4 = scmp.lt.s32.totalorder %s236_s13, %s236_s13 }
  0x2b   :  { %179 = vmatprep.subr.bf16.mxu0 %v268_v0 }
  0x2c   :  { %p243_p5 = por %p242_p4, %p241_p3 }
  0x2e   :  { %181 = vmatpush3.bf16.msra.mxu0 %v180_v7  ;;  %p244_p6 = pnand %p243_p5, %p237_p2 }
  0x31   :  { %174 = vmatmul.mubr.msk.f32.vlgmr.msra.gmra.mrb[0].mxu0 %vm52_vm1, %v47_v8 }
 0x104   :  { %v122_v10 = vpop.f32.mrb[0].mxu0 }
 0x105   :  { %v139_v11 = vadd.f32 %v159_v9, %v122_v10  ;;  %v175_v12 = vpop.f32.mrb[1].mxu0 }
 0x107   :  { %190 = vtanh.f32 %v139_v11 }
 0x111   :  { %v191_v13 = vpop.eup %190 }
 0x112   :  { %141 = vst [vmem:[#allocation8] sm:$0xff] %v191_v13 }
 0x113   :  { %247 = shalt.err (!%p244_p6)
}
 0x114   :  { %s248_s2 = scalar_lea.hbm %s341_s3, 128 }
 0x115   :  { %p249_p7 = scmp.ne.s32.totalorder %s341_s3, %s248_s2  ;;  %p252_p8 = scmp.lt.u32.totalorder %s248_s2, %s341_s3 }
 0x117   :  { %p254_p9 = pnand %p252_p8, %p249_p7 }
 0x119   :  { %257 = shalt.err (!%p254_p9)
}
 0x11a   :  { %151 = dma.vmem_to_hbm [thread:$0]  %s149_s12, 128, %s341_s3, [#allocation5]  }
 0x11b   :  { %262 = dma.done.wait [#allocation5], 128  }
 0x11c   :  { %263 = vsyncadd [#allocation5], 4294967168 }
 0x11d   :  { %155 = vsyncpa [#allocation4], 1 }
 0x11e   :  { %156 = vsyncpa [#allocation7], 1 }
 0x11f   :  { %157 = vsyncpa [#allocation5], 1 }

</bundles_post_ra>
